<compile_context>
chip_gen: v7x
topology: tpu7x:2x2x1
jax: 0.10.0
libtpu: 0.0.40
codegen_flags: <defaults>
</compile_context>

<pallas_src>
import functools

import jax
import jax.numpy as jnp
from jax import lax
from jax.experimental import pallas as pl
from jax.experimental.pallas import tpu as pltpu

_MIB = 1024 * 1024


def _round_up(x, m):
    return ((x + m - 1) // m) * m


def _gelu(h, approx):
    if approx:
        # tanh-approx GELU: tanh routes through the EUP (separate VLIW slot),
        # keeping the VALU free once the kernel is MXU-bound.
        c = 0.7978845608028654  # sqrt(2/pi)
        return 0.5 * h * (1.0 + jnp.tanh(c * (h + 0.044715 * h * h * h)))
    # Exact erf GELU == torch.nn.GELU() default.
    return 0.5 * h * (1.0 + lax.erf(h * 0.7071067811865476))


def _layernorm_f32(x_ref, g_ref, b_ref):
    x = x_ref[...].astype(jnp.float32)
    mean = jnp.mean(x, axis=-1, keepdims=True)
    cen = x - mean
    var = jnp.mean(cen * cen, axis=-1, keepdims=True)
    xn = cen * lax.rsqrt(var + 1e-5)
    return xn * g_ref[...].astype(jnp.float32) + b_ref[...].astype(jnp.float32)


# --------------------------------------------------------------------------
# Kernel A: weights resident in VMEM, grid = (row_tiles,)
# --------------------------------------------------------------------------
def _ffn_resident_kernel(x_ref, g_ref, beta_ref, w1_ref, b1_ref, w2_ref, b2_ref,
                         o_ref, *, gelu_approx):
    xn = _layernorm_f32(x_ref, g_ref, beta_ref)
    h = jnp.dot(xn.astype(w1_ref.dtype), w1_ref[...],
                preferred_element_type=jnp.float32)
    h = _gelu(h + b1_ref[...].astype(jnp.float32), gelu_approx)
    out = jnp.dot(h.astype(w2_ref.dtype), w2_ref[...],
                  preferred_element_type=jnp.float32)
    o_ref[...] = (out + b2_ref[...].astype(jnp.float32)).astype(o_ref.dtype)


# --------------------------------------------------------------------------
# Kernel B: hidden dimension streamed, grid = (row_tiles, hidden_tiles)
# --------------------------------------------------------------------------
def _ffn_stream_kernel(x_ref, g_ref, beta_ref, w1_ref, b1_ref, w2_ref, b2_ref,
                       o_ref, xn_ref, acc_ref, *, gelu_approx):
    j = pl.program_id(1)

    @pl.when(j == 0)
    def _():
        xn = _layernorm_f32(x_ref, g_ref, beta_ref)
        xn_ref[...] = xn.astype(xn_ref.dtype)   # cached for all hidden tiles
        acc_ref[...] = jnp.zeros_like(acc_ref)

    h = jnp.dot(xn_ref[...], w1_ref[...], preferred_element_type=jnp.float32)
    h = _gelu(h + b1_ref[...].astype(jnp.float32), gelu_approx)
    acc_ref[...] += jnp.dot(h.astype(w2_ref.dtype), w2_ref[...],
                            preferred_element_type=jnp.float32)

    @pl.when(j == pl.num_programs(1) - 1)
    def _():
        o_ref[...] = (acc_ref[...] + b2_ref[...].astype(jnp.float32)).astype(o_ref.dtype)


def _vmem_caps():
    """(scoped vmem limit to request, budget for our own working set)."""
    try:
        cap = int(pltpu.get_tpu_info().vmem_capacity_bytes)
    except Exception:
        cap = 128 * _MIB
    # Leave headroom for Mosaic internal scratch / semaphores: 112 MiB on
    # 128 MiB chips (v5e/v6e), ~56 MiB on v7x's 64 MiB per-TC VMEM.
    vmem_limit = max(32 * _MIB, min(cap - 8 * _MIB, 112 * _MIB))
    budget = vmem_limit - 8 * _MIB
    return vmem_limit, budget


@functools.partial(
    jax.jit,
    static_argnames=("tile_m", "tile_n", "compute_dtype", "gelu_approx",
                     "allow_resident"))
def feed_forward(x, params, *, tile_m=512, tile_n=1024,
                 compute_dtype=jnp.bfloat16, gelu_approx=False,
                 allow_resident=True):
    """x: (..., dim). params: ln_g, ln_b, w1 (dim, hidden), b1, w2 (hidden, dim),
    b2 — Linear weights already transposed from PyTorch's (out, in)."""
    ln_g, ln_b = params["ln_g"], params["ln_b"]
    w1, b1 = params["w1"], params["b1"]
    w2, b2 = params["w2"], params["b2"]

    dim = x.shape[-1]
    hidden = w1.shape[1]
    orig_shape = x.shape
    x2d = x.reshape(-1, dim)
    n_rows = x2d.shape[0]

    x_b = x2d.dtype.itemsize
    o_b = x2d.dtype.itemsize
    c_b = jnp.dtype(compute_dtype).itemsize

    vmem_limit, budget = _vmem_caps()

    # ------------------------------ row tile ------------------------------
    if n_rows <= tile_m:
        if n_rows > 32:
            # >=2 row tiles so both v7x TensorCores get work (megacore).
            tm = _round_up(-(-n_rows // 2), 16)
        else:
            tm = _round_up(max(n_rows, 1), 8)
    else:
        tm = max(16, (tile_m // 16) * 16)      # default 512 = MXU-friendly

    # -------------------- weights-resident fast path? ---------------------
    def _resident_bytes(t):
        return (2 * 2 * dim * hidden * c_b          # W1 + W2 (double-buffered)
                + 2 * t * dim * (x_b + o_b)         # x / out blocks
                + t * hidden * (4 + c_b)            # h intermediate (f32 + cast)
                + 2 * t * dim * 4                   # LN temporaries
                + 2 * _MIB)                         # biases / misc

    use_resident = False
    if allow_resident:
        t = tm
        while True:
            if _resident_bytes(t) <= budget:
                tm, use_resident = t, True
                break
            if t <= 64:
                break
            t = max(64, _round_up(t // 2, 16))

    # --------------------- streaming tile sizes (fallback) ----------------
    if not use_resident:
        if hidden <= tile_n:
            tn = hidden
        else:
            tn = max(128, (tile_n // 128) * 128)

        def _stream_bytes(t, n):
            return (2 * t * dim * (x_b + o_b)       # x / out blocks
                    + 2 * dim * n * c_b             # W1 column tile
                    + 2 * n * dim * c_b             # W2 row tile
                    + t * dim * c_b                 # LN cache scratch
                    + t * dim * 4                   # f32 accumulator scratch
                    + t * n * (4 + c_b)             # h intermediate
                    + 2 * _MIB)

        while _stream_bytes(tm, tn) > budget:
            if tn > 512:
                tn = max(512, _round_up(tn // 2, 128))
            elif tm > 128:
                tm = max(128, _round_up(tm // 2, 16))
            elif tn > 128:
                tn = max(128, _round_up(tn // 2, 128))
            else:
                break

    # ------------------------- padding / reshapes -------------------------
    rows_p = _round_up(n_rows, tm)
    if rows_p != n_rows:
        x2d = jnp.pad(x2d, ((0, rows_p - n_rows), (0, 0)))
    grid_rows = rows_p // tm

    w1c = w1.astype(compute_dtype)
    w2c = w2.astype(compute_dtype)
    ln_g2 = ln_g.reshape(1, dim).astype(jnp.float32)
    ln_b2 = ln_b.reshape(1, dim).astype(jnp.float32)
    b2_2 = b2.reshape(1, dim).astype(jnp.float32)

    if use_resident:
        b1_2 = b1.reshape(1, hidden).astype(jnp.float32)
        cost = pl.CostEstimate(
            flops=4 * rows_p * dim * hidden,
            transcendentals=rows_p * hidden,
            bytes_accessed=(x2d.size * x_b + rows_p * dim * o_b
                            + (w1c.size + w2c.size) * c_b),   # weights read once
        )
        kernel = functools.partial(_ffn_resident_kernel, gelu_approx=gelu_approx)
        out = pl.pallas_call(
            kernel,
            out_shape=jax.ShapeDtypeStruct((rows_p, dim), x.dtype),
            grid_spec=pltpu.PrefetchScalarGridSpec(
                num_scalar_prefetch=0,
                grid=(grid_rows,),
                in_specs=[
                    pl.BlockSpec((tm, dim), lambda i: (i, 0)),        # x rows
                    pl.BlockSpec((1, dim), lambda i: (0, 0)),         # LN gamma
                    pl.BlockSpec((1, dim), lambda i: (0, 0)),         # LN beta
                    pl.BlockSpec((dim, hidden), lambda i: (0, 0)),    # W1 resident
                    pl.BlockSpec((1, hidden), lambda i: (0, 0)),      # b1
                    pl.BlockSpec((hidden, dim), lambda i: (0, 0)),    # W2 resident
                    pl.BlockSpec((1, dim), lambda i: (0, 0)),         # b2
                ],
                out_specs=pl.BlockSpec((tm, dim), lambda i: (i, 0)),
            ),
            compiler_params=pltpu.CompilerParams(
                dimension_semantics=("parallel",),
                vmem_limit_bytes=vmem_limit,
            ),
            cost_estimate=cost,
        )(x2d, ln_g2, ln_b2, w1c, b1_2, w2c, b2_2)
    else:
        hid_p = _round_up(hidden, tn)
        b1f = b1.astype(jnp.float32)
        if hid_p != hidden:
            w1c = jnp.pad(w1c, ((0, 0), (0, hid_p - hidden)))
            b1f = jnp.pad(b1f, ((0, hid_p - hidden),))
            w2c = jnp.pad(w2c, ((0, hid_p - hidden), (0, 0)))
        b1_2 = b1f.reshape(1, hid_p)

        cost = pl.CostEstimate(
            flops=4 * rows_p * dim * hid_p,
            transcendentals=rows_p * hid_p,
            bytes_accessed=(x2d.size * x_b + rows_p * dim * o_b
                            + grid_rows * (w1c.size + w2c.size) * c_b),
        )
        kernel = functools.partial(_ffn_stream_kernel, gelu_approx=gelu_approx)
        out = pl.pallas_call(
            kernel,
            out_shape=jax.ShapeDtypeStruct((rows_p, dim), x.dtype),
            grid_spec=pltpu.PrefetchScalarGridSpec(
                num_scalar_prefetch=0,
                grid=(grid_rows, hid_p // tn),
                in_specs=[
                    pl.BlockSpec((tm, dim), lambda i, j: (i, 0)),     # x rows
                    pl.BlockSpec((1, dim), lambda i, j: (0, 0)),      # LN gamma
                    pl.BlockSpec((1, dim), lambda i, j: (0, 0)),      # LN beta
                    pl.BlockSpec((dim, tn), lambda i, j: (0, j)),     # W1 col tile
                    pl.BlockSpec((1, tn), lambda i, j: (0, j)),       # b1 tile
                    pl.BlockSpec((tn, dim), lambda i, j: (j, 0)),     # W2 row tile
                    pl.BlockSpec((1, dim), lambda i, j: (0, 0)),      # b2
                ],
                out_specs=pl.BlockSpec((tm, dim), lambda i, j: (i, 0)),
                scratch_shapes=[
                    pltpu.VMEM((tm, dim), compute_dtype),   # cached LN(x)
                    pltpu.VMEM((tm, dim), jnp.float32),     # f32 accumulator
                ],
            ),
            compiler_params=pltpu.CompilerParams(
                dimension_semantics=("parallel", "arbitrary"),
                vmem_limit_bytes=vmem_limit,
            ),
            cost_estimate=cost,
        )(x2d, ln_g2, ln_b2, w1c, b1_2, w2c, b2_2)

    return out[:n_rows].reshape(orig_shape)


def init_params(key, dim, hidden_dim, dtype=jnp.float32):
    """Parameter init mirroring the PyTorch module's shapes.
    Linear weights stored pre-transposed as (in, out)."""
    k1, k2, k3, k4 = jax.random.split(key, 4)
    lim1 = 1.0 / jnp.sqrt(dim)
    lim2 = 1.0 / jnp.sqrt(hidden_dim)
    return {
        "ln_g": jnp.ones((dim,), dtype),
        "ln_b": jnp.zeros((dim,), dtype),
        "w1": jax.random.uniform(k1, (dim, hidden_dim), dtype, -lim1, lim1),
        "b1": jax.random.uniform(k2, (hidden_dim,), dtype, -lim1, lim1),
        "w2": jax.random.uniform(k3, (hidden_dim, dim), dtype, -lim2, lim2),
        "b2": jax.random.uniform(k4, (dim,), dtype, -lim2, lim2),
    }


def _reference(x, p):
    mean = jnp.mean(x, axis=-1, keepdims=True)
    var = jnp.mean((x - mean) ** 2, axis=-1, keepdims=True)
    xn = (x - mean) / jnp.sqrt(var + 1e-5) * p["ln_g"] + p["ln_b"]
    h = jnp.dot(xn, p["w1"], precision=lax.Precision.HIGHEST) + p["b1"]
    h = 0.5 * h * (1.0 + lax.erf(h / jnp.sqrt(2.0)))
    return jnp.dot(h, p["w2"], precision=lax.Precision.HIGHEST) + p["b2"]


if __name__ == "__main__":
    key = jax.random.PRNGKey(0)
    kx, kp, kx2, kp2 = jax.random.split(key, 4)

    # ---- Small case (exercises the weights-resident fast path) ----
    batch, seq, dim, hidden_dim = 2, 8, 32, 64
    x = jax.random.normal(kx, (batch, seq, dim), jnp.float32)
    params = init_params(kp, dim, hidden_dim)
    y_ref = _reference(x, params)

    y32 = jax.block_until_ready(feed_forward(x, params, compute_dtype=jnp.float32))
    assert y32.shape == x.shape
    assert jnp.allclose(y32, y_ref, atol=1e-4, rtol=1e-4), "f32 mismatch vs reference"

    ybf = jax.block_until_ready(feed_forward(x, params))
    assert jnp.allclose(ybf.astype(jnp.float32), y_ref, atol=2e-2, rtol=2e-2), \
        "bf16 mismatch vs reference"

    yap = jax.block_until_ready(
        feed_forward(x, params, compute_dtype=jnp.float32, gelu_approx=True))
    assert jnp.allclose(yap, y_ref, atol=3e-2, rtol=3e-2), \
        "tanh-approx GELU mismatch vs exact reference"

    # ---- Larger case forced through the hidden-streaming path ----
    b2s, s2s, d2s, h2s = 4, 16, 128, 256
    x2 = jax.random.normal(kx2, (b2s, s2s, d2s), jnp.float32)
    p2 = init_params(kp2, d2s, h2s)
    y2_ref = _reference(x2, p2)
    y2 = jax.block_until_ready(feed_forward(
        x2, p2, compute_dtype=jnp.float32, tile_m=32, tile_n=128,
        allow_resident=False))
    assert y2.shape == x2.shape
    assert jnp.allclose(y2, y2_ref, atol=1e-3, rtol=1e-3), \
        "streaming-path mismatch vs reference"

    print("KERNEL_OK")
</pallas_src>

<mosaic_0001>
module attributes {stable_mosaic.version = 11 : i64} {
  func.func @_ffn_resident_kernel(%arg0: i32, %arg1: memref<16x32xf32, #tpu.memory_space<vmem>>, %arg2: memref<1x32xf32, #tpu.memory_space<vmem>>, %arg3: memref<1x32xf32, #tpu.memory_space<vmem>>, %arg4: memref<32x64xf32, #tpu.memory_space<vmem>>, %arg5: memref<1x64xf32, #tpu.memory_space<vmem>>, %arg6: memref<64x32xf32, #tpu.memory_space<vmem>>, %arg7: memref<1x32xf32, #tpu.memory_space<vmem>>, %arg8: memref<16x32xf32, #tpu.memory_space<vmem>>) attributes {dimension_semantics = [#tpu.dimension_semantics<parallel>], iteration_bounds = array<i64: 1>, scalar_prefetch = 0 : i64, scratch_operands = 0 : i64, tpu.core_type = #tpu.core_type<tc>, window_params = [{transform_indices = @transform_0, window_bounds = array<i64: 16, 32>}, {pipeline_mode = #tpu.pipeline_mode<synchronous>, transform_indices = @transform_1, window_bounds = array<i64: 1, 32>}, {pipeline_mode = #tpu.pipeline_mode<synchronous>, transform_indices = @transform_2, window_bounds = array<i64: 1, 32>}, {pipeline_mode = #tpu.pipeline_mode<synchronous>, transform_indices = @transform_3, window_bounds = array<i64: 32, 64>}, {pipeline_mode = #tpu.pipeline_mode<synchronous>, transform_indices = @transform_4, window_bounds = array<i64: 1, 64>}, {pipeline_mode = #tpu.pipeline_mode<synchronous>, transform_indices = @transform_5, window_bounds = array<i64: 64, 32>}, {pipeline_mode = #tpu.pipeline_mode<synchronous>, transform_indices = @transform_6, window_bounds = array<i64: 1, 32>}, {transform_indices = @transform_7, window_bounds = array<i64: 16, 32>}]} {
    %c0 = arith.constant 0 : index
    %c0_0 = arith.constant 0 : index
    %0 = vector.load %arg1[%c0, %c0_0] : memref<16x32xf32, #tpu.memory_space<vmem>>, vector<16x32xf32>
    %cst = arith.constant dense<0.000000e+00> : vector<16xf32>
    %1 = vector.multi_reduction <add>, %0, %cst [1] : vector<16x32xf32> to vector<16xf32>
    %2 = vector.shape_cast %1 : vector<16xf32> to vector<16x1xf32>
    %cst_1 = arith.constant 3.200000e+01 : f32
    %3 = vector.broadcast %cst_1 : f32 to vector<16x1xf32>
    %4 = arith.divf %2, %3 : vector<16x1xf32>
    %5 = vector.broadcast %4 : vector<16x1xf32> to vector<16x32xf32>
    %6 = arith.subf %0, %5 : vector<16x32xf32>
    %7 = arith.mulf %6, %6 : vector<16x32xf32>
    %cst_2 = arith.constant dense<0.000000e+00> : vector<16xf32>
    %8 = vector.multi_reduction <add>, %7, %cst_2 [1] : vector<16x32xf32> to vector<16xf32>
    %9 = vector.shape_cast %8 : vector<16xf32> to vector<16x1xf32>
    %cst_3 = arith.constant 3.200000e+01 : f32
    %10 = vector.broadcast %cst_3 : f32 to vector<16x1xf32>
    %11 = arith.divf %9, %10 : vector<16x1xf32>
    %cst_4 = arith.constant 9.99999974E-6 : f32
    %12 = vector.broadcast %cst_4 : f32 to vector<16x1xf32>
    %13 = arith.addf %11, %12 : vector<16x1xf32>
    %14 = math.rsqrt %13 : vector<16x1xf32>
    %15 = vector.broadcast %14 : vector<16x1xf32> to vector<16x32xf32>
    %16 = arith.mulf %6, %15 : vector<16x32xf32>
    %c0_5 = arith.constant 0 : index
    %c0_6 = arith.constant 0 : index
    %17 = vector.load %arg2[%c0_5, %c0_6] : memref<1x32xf32, #tpu.memory_space<vmem>>, vector<1x32xf32>
    %18 = vector.broadcast %17 : vector<1x32xf32> to vector<16x32xf32>
    %19 = arith.mulf %16, %18 : vector<16x32xf32>
    %c0_7 = arith.constant 0 : index
    %c0_8 = arith.constant 0 : index
    %20 = vector.load %arg3[%c0_7, %c0_8] : memref<1x32xf32, #tpu.memory_space<vmem>>, vector<1x32xf32>
    %21 = vector.broadcast %20 : vector<1x32xf32> to vector<16x32xf32>
    %22 = arith.addf %19, %21 : vector<16x32xf32>
    %c0_9 = arith.constant 0 : index
    %c0_10 = arith.constant 0 : index
    %23 = vector.load %arg4[%c0_9, %c0_10] : memref<32x64xf32, #tpu.memory_space<vmem>>, vector<32x64xf32>
    %cst_11 = arith.constant dense<0.000000e+00> : vector<16x64xf32>
    %24 = tpu.matmul %22, %23, %cst_11 {dimension_numbers = #tpu.dot_dimension_numbers<[1], [0], [0], [1], [0, 0, 1, 1], [], []>} : vector<16x32xf32>, vector<32x64xf32>, vector<16x64xf32> -> vector<16x64xf32>
    %c0_12 = arith.constant 0 : index
    %c0_13 = arith.constant 0 : index
    %25 = vector.load %arg5[%c0_12, %c0_13] : memref<1x64xf32, #tpu.memory_space<vmem>>, vector<1x64xf32>
    %26 = vector.broadcast %25 : vector<1x64xf32> to vector<16x64xf32>
    %27 = arith.addf %24, %26 : vector<16x64xf32>
    %cst_14 = arith.constant 5.000000e-01 : f32
    %28 = vector.broadcast %cst_14 : f32 to vector<16x64xf32>
    %29 = arith.mulf %28, %27 : vector<16x64xf32>
    %cst_15 = arith.constant 0.707106769 : f32
    %30 = vector.broadcast %cst_15 : f32 to vector<16x64xf32>
    %31 = arith.mulf %27, %30 : vector<16x64xf32>
    %32 = math.erf %31 : vector<16x64xf32>
    %cst_16 = arith.constant 1.000000e+00 : f32
    %33 = vector.broadcast %cst_16 : f32 to vector<16x64xf32>
    %34 = arith.addf %33, %32 : vector<16x64xf32>
    %35 = arith.mulf %29, %34 : vector<16x64xf32>
    %c0_17 = arith.constant 0 : index
    %c0_18 = arith.constant 0 : index
    %36 = vector.load %arg6[%c0_17, %c0_18] : memref<64x32xf32, #tpu.memory_space<vmem>>, vector<64x32xf32>
    %cst_19 = arith.constant dense<0.000000e+00> : vector<16x32xf32>
    %37 = tpu.matmul %35, %36, %cst_19 {dimension_numbers = #tpu.dot_dimension_numbers<[1], [0], [0], [1], [0, 0, 1, 1], [], []>} : vector<16x64xf32>, vector<64x32xf32>, vector<16x32xf32> -> vector<16x32xf32>
    %c0_20 = arith.constant 0 : index
    %c0_21 = arith.constant 0 : index
    %38 = vector.load %arg7[%c0_20, %c0_21] : memref<1x32xf32, #tpu.memory_space<vmem>>, vector<1x32xf32>
    %39 = vector.broadcast %38 : vector<1x32xf32> to vector<16x32xf32>
    %40 = arith.addf %37, %39 : vector<16x32xf32>
    %c0_22 = arith.constant 0 : index
    %c0_23 = arith.constant 0 : index
    %41 = vector.load %arg8[%c0_22, %c0_23] : memref<16x32xf32, #tpu.memory_space<vmem>>, vector<16x32xf32>
    tpu.vector_store %arg8[%c0_22, %c0_23], %40 {strides = array<i32>} : memref<16x32xf32, #tpu.memory_space<vmem>>, vector<16x32xf32>,
    return
  }
  func.func @transform_0(%arg0: i32) -> (i32, i32) {
    %c0_i32 = arith.constant 0 : i32
    %c0_i32_0 = arith.constant 0 : i32
    return %arg0, %c0_i32 : i32, i32
  }
  func.func @transform_1(%arg0: i32) -> (i32, i32) {
    %c0_i32 = arith.constant 0 : i32
    %c0_i32_0 = arith.constant 0 : i32
    %c0_i32_1 = arith.constant 0 : i32
    return %c0_i32, %c0_i32_0 : i32, i32
  }
  func.func @transform_2(%arg0: i32) -> (i32, i32) {
    %c0_i32 = arith.constant 0 : i32
    %c0_i32_0 = arith.constant 0 : i32
    %c0_i32_1 = arith.constant 0 : i32
    return %c0_i32, %c0_i32_0 : i32, i32
  }
  func.func @transform_3(%arg0: i32) -> (i32, i32) {
    %c0_i32 = arith.constant 0 : i32
    %c0_i32_0 = arith.constant 0 : i32
    %c0_i32_1 = arith.constant 0 : i32
    return %c0_i32, %c0_i32_0 : i32, i32
  }
  func.func @transform_4(%arg0: i32) -> (i32, i32) {
    %c0_i32 = arith.constant 0 : i32
    %c0_i32_0 = arith.constant 0 : i32
    %c0_i32_1 = arith.constant 0 : i32
    return %c0_i32, %c0_i32_0 : i32, i32
  }
  func.func @transform_5(%arg0: i32) -> (i32, i32) {
    %c0_i32 = arith.constant 0 : i32
    %c0_i32_0 = arith.constant 0 : i32
    %c0_i32_1 = arith.constant 0 : i32
    return %c0_i32, %c0_i32_0 : i32, i32
  }
  func.func @transform_6(%arg0: i32) -> (i32, i32) {
    %c0_i32 = arith.constant 0 : i32
    %c0_i32_0 = arith.constant 0 : i32
    %c0_i32_1 = arith.constant 0 : i32
    return %c0_i32, %c0_i32_0 : i32, i32
  }
  func.func @transform_7(%arg0: i32) -> (i32, i32) {
    %c0_i32 = arith.constant 0 : i32
    %c0_i32_0 = arith.constant 0 : i32
    return %arg0, %c0_i32 : i32, i32
  }
}

</mosaic_0001>

<bundles_post_ra>
// kernel: feed_forward.1
= control target key start
LH: loop header
LB: loop body
LE: loop exit
PB: predicated region body
PF: predicated region fallthrough
CT: control target
= control target key end

     0   :  { %12 = vsyncpa [#allocation3], 0  ;;  %s831_s0 = inlined_call_operand.hbm [shape: f32[16,32], index: 0, kind: input, shape index: {}]   ;;  %s832_s1 = inlined_call_operand.hbm [shape: f32[1,32], index: 1, kind: input, shape index: {}]   ;;  %s833_s2 = inlined_call_operand.hbm [shape: f32[1,32], index: 2, kind: input, shape index: {}]   ;;  %s834_s3 = inlined_call_operand.hbm [shape: f32[32,64], index: 3, kind: input, shape index: {}]   ;;  %s835_s4 = inlined_call_operand.hbm [shape: f32[1,64], index: 4, kind: input, shape index: {}]   ;;  %s836_s5 = inlined_call_operand.hbm [shape: f32[64,32], index: 5, kind: input, shape index: {}]   ;;  %s837_s6 = inlined_call_operand.hbm [shape: f32[1,32], index: 6, kind: input, shape index: {}]   ;;  %s838_s7 = inlined_call_operand.hbm [shape: f32[16,32], index: 7, kind: output, shape index: {}]  }
   0x1   :  { %13 = vsyncpa [#allocation6], 0 }
   0x2   :  { %14 = vsyncpa [#allocation9], 0 }
   0x3   :  { %15 = vsyncpa [#allocation12], 0 }
   0x4   :  { %16 = vsyncpa [#allocation4], 0  ;;  %s665_s24 = smov [#allocation5]   ;;  %s479_s28 = scalar_lea.hbm %s832_s1, 16 }
   0x5   :  { %s35_s25 = sshll.u32 %s665_s24, 4  ;;  %p480_p0 = scmp.ne.s32.totalorder %s832_s1, %s479_s28  ;;  %s36_s25 = int_to_ptr.vmem [resolvable:$true] %s35_s25 }
   0x6   :  { %p483_p1 = scmp.lt.u32.totalorder %s479_s28, %s832_s1 }
   0x8   :  { %p485_p2 = pnand %p483_p1, %p480_p0 }
   0xa   :  { %488 = shalt.err (!%p485_p2)
}
   0xb   :  { %s489_s10 = scalar_lea.vmem %s36_s25, 16  ;;  %s493_s11 = scalar_lea.vmem %s36_s25, 32 }
   0xc   :  { %p490_p3 = scmp.ne.s32.totalorder %s36_s25, %s489_s10  ;;  %p494_p4 = scmp.lt.s32.totalorder %s36_s25, %s36_s25 }
   0xd   :  { %p495_p5 = scmp.lt.s32.totalorder %s493_s11, %s489_s10 }
   0xf   :  { %p496_p6 = por %p495_p5, %p494_p4 }
  0x11   :  { %p497_p7 = pnand %p496_p6, %p490_p3 }
  0x13   :  { %500 = shalt.err (!%p497_p7)
}
  0x14   :  { %38 = dma.hbm_to_vmem [thread:$0]  %s832_s1, 16, %s36_s25, [#allocation6]  }
  0x15   :  { %s666_s14 = smov [#allocation8]   ;;  %s667_s16 = smov [#allocation11]  }
  0x16   :  { %s54_s15 = sshll.u32 %s666_s14, 4  ;;  %s76_s17 = sshll.u32 %s667_s16, 4  ;;  %s55_s15 = int_to_ptr.vmem [resolvable:$true] %s54_s15  ;;  %s77_s17 = int_to_ptr.vmem [resolvable:$true] %s76_s17 }
  0x17   :  { %s501_s20 = scalar_lea.hbm %s834_s3, 512 }
  0x18   :  { %p502_p8 = scmp.ne.s32.totalorder %s834_s3, %s501_s20  ;;  %p505_p9 = scmp.lt.u32.totalorder %s501_s20, %s834_s3 }
  0x1a   :  { %p507_p10 = pnand %p505_p9, %p502_p8 }
  0x1c   :  { %510 = shalt.err (!%p507_p10)
}
  0x1d   :  { %s511_s1 = scalar_lea.vmem %s55_s15, 512  ;;  %p516_p12 = scmp.lt.s32.totalorder %s55_s15, %s55_s15 }
  0x1e   :  { %p512_p11 = scmp.ne.s32.totalorder %s55_s15, %s511_s1  ;;  %p517_p13 = scmp.lt.s32.totalorder %s511_s1, %s511_s1 }
  0x20   :  { %p518_p0 = por %p517_p13, %p516_p12 }
  0x22   :  { %p519_p1 = pnand %p518_p0, %p512_p11 }
  0x24   :  { %522 = shalt.err (!%p519_p1)
}
  0x25   :  { %s668_s25 = smov 128   ;;  %s669_s26 = smov 8  }
  0x26   :  { %60 = dma.hbm_to_vmem [thread:$0]  %s834_s3, 512, %s55_s15, [#allocation9], %s668_s25, %s668_s25, %s669_s26  }
  0x27   :  { %s523_s8 = scalar_lea.hbm %s836_s5, 1024 }
  0x28   :  { %p524_p2 = scmp.ne.s32.totalorder %s836_s5, %s523_s8  ;;  %p527_p3 = scmp.lt.u32.totalorder %s523_s8, %s836_s5 }
  0x2a   :  { %p529_p4 = pnand %p527_p3, %p524_p2 }
  0x2c   :  { %532 = shalt.err (!%p529_p4)
}
  0x2d   :  { %s533_s13 = scalar_lea.vmem %s77_s17, 1024  ;;  %p538_p6 = scmp.lt.s32.totalorder %s77_s17, %s77_s17 }
  0x2e   :  { %p534_p5 = scmp.ne.s32.totalorder %s77_s17, %s533_s13  ;;  %p539_p7 = scmp.lt.s32.totalorder %s533_s13, %s533_s13 }
  0x30   :  { %p540_p8 = por %p539_p7, %p538_p6 }
  0x32   :  { %p541_p9 = pnand %p540_p8, %p534_p5 }
  0x34   :  { %544 = shalt.err (!%p541_p9)
}
  0x35   :  { %82 = dma.hbm_to_vmem [thread:$0]  %s836_s5, 1024, %s77_s17, [#allocation12], %s668_s25, %s668_s25, %s669_s26  }
  0x36   :  { %s670_s15 = smov [#allocation2]   ;;  %s671_s18 = smov [#allocation7]  }
  0x37   :  { %s22_s16 = sshll.u32 %s670_s15, 4  ;;  %s45_s19 = sshll.u32 %s671_s18, 4  ;;  %s23_s16 = int_to_ptr.vmem [resolvable:$true] %s22_s16  ;;  %s46_s19 = int_to_ptr.vmem [resolvable:$true] %s45_s19 }
  0x38   :  { %s545_s22 = scalar_lea.hbm %s831_s0, 256 }
  0x39   :  { %p546_p10 = scmp.ne.s32.totalorder %s831_s0, %s545_s22  ;;  %p549_p11 = scmp.lt.u32.totalorder %s545_s22, %s831_s0 }
  0x3b   :  { %p551_p12 = pnand %p549_p11, %p546_p10 }
  0x3d   :  { %554 = shalt.err (!%p551_p12)
}
  0x3e   :  { %s555_s5 = scalar_lea.vmem %s23_s16, 256  ;;  %p560_p0 = scmp.lt.s32.totalorder %s23_s16, %s23_s16 }
  0x3f   :  { %p556_p13 = scmp.ne.s32.totalorder %s23_s16, %s555_s5  ;;  %p561_p1 = scmp.lt.s32.totalorder %s555_s5, %s555_s5 }
  0x41   :  { %p562_p2 = por %p561_p1, %p560_p0 }
  0x43   :  { %p563_p3 = pnand %p562_p2, %p556_p13 }
  0x45   :  { %566 = shalt.err (!%p563_p3)
}
  0x46   :  { %28 = dma.hbm_to_vmem [thread:$0]  %s831_s0, 256, %s23_s16, [#allocation3], %s668_s25, %s668_s25, %s669_s26  }
  0x47   :  { %s567_s8 = scalar_lea.hbm %s833_s2, 16 }
  0x48   :  { %p568_p4 = scmp.ne.s32.totalorder %s833_s2, %s567_s8  ;;  %p571_p5 = scmp.lt.u32.totalorder %s567_s8, %s833_s2 }
  0x4a   :  { %p573_p6 = pnand %p571_p5, %p568_p4 }
  0x4c   :  { %576 = shalt.err (!%p573_p6)
}
  0x4d   :  { %s577_s13 = scalar_lea.vmem %s46_s19, 16  ;;  %s581_s3 = scalar_lea.vmem %s46_s19, 32 }
  0x4e   :  { %p578_p7 = scmp.ne.s32.totalorder %s46_s19, %s577_s13  ;;  %p582_p8 = scmp.lt.s32.totalorder %s46_s19, %s46_s19 }
  0x4f   :  { %p583_p9 = scmp.lt.s32.totalorder %s581_s3, %s577_s13 }
  0x51   :  { %p584_p10 = por %p583_p9, %p582_p8 }
  0x53   :  { %p585_p11 = pnand %p584_p10, %p578_p7 }
  0x55   :  { %588 = shalt.err (!%p585_p11)
}
  0x56   :  { %48 = dma.hbm_to_vmem [thread:$0]  %s833_s2, 16, %s46_s19, [#allocation6]  }
  0x57   :  { %s672_s15 = smov [#allocation10]   ;;  %s673_s18 = smov [#allocation13]  }
  0x58   :  { %s67_s16 = sshll.u32 %s672_s15, 4  ;;  %s89_s20 = sshll.u32 %s673_s18, 4  ;;  %s68_s16 = int_to_ptr.vmem [resolvable:$true] %s67_s16  ;;  %s90_s20 = int_to_ptr.vmem [resolvable:$true] %s89_s20 }
  0x59   :  { %s589_s23 = scalar_lea.hbm %s835_s4, 16 }
  0x5a   :  { %p590_p12 = scmp.ne.s32.totalorder %s835_s4, %s589_s23  ;;  %p593_p13 = scmp.lt.u32.totalorder %s589_s23, %s835_s4 }
  0x5c   :  { %p595_p0 = pnand %p593_p13, %p590_p12 }
  0x5e   :  { %598 = shalt.err (!%p595_p0)
}
  0x5f   :  { %s599_s2 = scalar_lea.vmem %s68_s16, 16  ;;  %s603_s19 = scalar_lea.vmem %s68_s16, 32 }
  0x60   :  { %p600_p1 = scmp.ne.s32.totalorder %s68_s16, %s599_s2  ;;  %p604_p2 = scmp.lt.s32.totalorder %s68_s16, %s68_s16 }
  0x61   :  { %p605_p3 = scmp.lt.s32.totalorder %s603_s19, %s599_s2 }
  0x63   :  { %p606_p4 = por %p605_p3, %p604_p2 }
  0x65   :  { %p607_p5 = pnand %p606_p4, %p600_p1 }
  0x67   :  { %610 = shalt.err (!%p607_p5)
}
  0x68   :  { %70 = dma.hbm_to_vmem [thread:$0]  %s835_s4, 16, %s68_s16, [#allocation9]  }
  0x69   :  { %s611_s8 = scalar_lea.hbm %s837_s6, 16 }
  0x6a   :  { %p612_p6 = scmp.ne.s32.totalorder %s837_s6, %s611_s8  ;;  %p615_p7 = scmp.lt.u32.totalorder %s611_s8, %s837_s6 }
  0x6c   :  { %p617_p8 = pnand %p615_p7, %p612_p6 }
  0x6e   :  { %620 = shalt.err (!%p617_p8)
}
  0x6f   :  { %s621_s13 = scalar_lea.vmem %s90_s20, 16  ;;  %s625_s3 = scalar_lea.vmem %s90_s20, 32 }
  0x70   :  { %p622_p9 = scmp.ne.s32.totalorder %s90_s20, %s621_s13  ;;  %p626_p10 = scmp.lt.s32.totalorder %s90_s20, %s90_s20 }
  0x71   :  { %p627_p11 = scmp.lt.s32.totalorder %s625_s3, %s621_s13 }
  0x73   :  { %p628_p12 = por %p627_p11, %p626_p10 }
  0x75   :  { %p629_p13 = pnand %p628_p12, %p622_p9 }
  0x77   :  { %632 = shalt.err (!%p629_p13)
}
  0x78   :  { %92 = dma.hbm_to_vmem [thread:$0]  %s837_s6, 16, %s90_s20, [#allocation12]  }
  0x79   :  { %655 = dma.done.wait [#allocation3], 256  }
  0x7a   :  { %656 = vsyncadd [#allocation3], 4294967040 }
  0x7b   :  { %657 = dma.done.wait [#allocation6], 32  }
  0x7c   :  { %658 = vsyncadd [#allocation6], 4294967264 }
  0x7d   :  { %659 = dma.done.wait [#allocation9], 528  }
  0x7e   :  { %660 = vsyncadd [#allocation9], 4294966768 }
  0x7f   :  { %661 = dma.done.wait [#allocation12], 1040  }
  0x80   :  { %662 = vsyncadd [#allocation12], 4294966256  ;;  %vm116_vm0 = vcmask 261120   ;;  %v114_v0 = vld [vmem:[#allocation2] sm:$0xff]  ;;  %v115_v1 = vld [vmem:[#allocation2 + $0x8] sm:$0xff]  ;;  %vm279_vm1 = vcmask 523264  }
  0x81   :  { %v117_v2 = vsel %vm116_vm0, %v114_v0, 0.0  ;;  %v120_v3 = vsel %vm116_vm0, %v115_v1, 0.0  ;;  %v162_v14 = vld [vmem:[#allocation8] sm:$0xff]  ;;  %v163_v15 = vld [vmem:[#allocation8 + $0x8] sm:$0xff]  ;;  %v164_v16 = vld [vmem:[#allocation8 + $0x10] sm:$0xff]  ;;  %s674_s6 = smov [#allocation14]  }
  0x82   :  { %118 = vadd.xlane.f32.xlu0 %v117_v2  ;;  %v437_v17 = vpack.c.bf16 %v163_v15, %v162_v14  ;;  %v165_v18 = vld [vmem:[#allocation8 + $0x18] sm:$0xff]  ;;  %v264_v36 = vld [vmem:[#allocation11] sm:$0xff]  ;;  %v265_v37 = vld [vmem:[#allocation11 + $0x8] sm:$0xff]  ;;  %s368_s14 = sshll.u32 %s674_s6, 4  ;;  %s369_s14 = int_to_ptr.vmem [resolvable:$true] %s368_s14 }
  0x83   :  { %v441_v19 = vpack.c.bf16 %v165_v18, %v164_v16  ;;  %v383_v27 = vld [vmem:[#allocation5] ss:$0 sm:$0xff]  ;;  %v384_v29 = vld [vmem:[#allocation7] ss:$0 sm:$0xff]  ;;  %v445_v38 = vpack.c.bf16 %v265_v37, %v264_v36  ;;  %v266_v39 = vld [vmem:[#allocation11 + $0x10] sm:$0xff]  ;;  %s633_s15 = scalar_lea.vmem %s369_s14, 256  ;;  %p638_p1 = scmp.lt.s32.totalorder %s369_s14, %s369_s14 }
  0x84   :  { %438 = vmatprep.subr.bf16.mxu0 %v437_v17  ;;  %v267_v40 = vld [vmem:[#allocation11 + $0x18] sm:$0xff]  ;;  %v268_v42 = vld [vmem:[#allocation11 + $0x20] sm:$0xff]  ;;  %v269_v43 = vld [vmem:[#allocation11 + $0x28] sm:$0xff]  ;;  %p634_p0 = scmp.ne.s32.totalorder %s369_s14, %s633_s15  ;;  %p639_p2 = scmp.lt.s32.totalorder %s633_s15, %s633_s15 }
  0x85   :  { %440 = vmatpush3.bf16.msra.mxu0 %v437_v17  ;;  %446 = vmatprep.subr.bf16.mxu1 %v445_v38  ;;  %v449_v41 = vpack.c.bf16 %v267_v40, %v266_v39  ;;  %v453_v44 = vpack.c.bf16 %v269_v43, %v268_v42  ;;  %v270_v45 = vld [vmem:[#allocation11 + $0x30] sm:$0xff]  ;;  %v271_v46 = vld [vmem:[#allocation11 + $0x38] sm:$0xff]  ;;  %v388_v63 = vld [vmem:[#allocation13] ss:$0 sm:$0xff] }
  0x86   :  { %121 = vadd.xlane.f32.xlu0 %v120_v3  ;;  %442 = vmatprep.subr.bf16.mxu0 %v441_v19  ;;  %v457_v47 = vpack.c.bf16 %v271_v46, %v270_v45  ;;  %v385_v48 = vld [vmem:[#allocation10] ss:$0 sm:$0xff]  ;;  %p640_p3 = por %p639_p2, %p638_p1 }
  0x87   :  { %448 = vmatpush3.bf16.msra.mxu1 %v445_v38 }
  0x88   :  { %450 = vmatprep.subr.bf16.mxu1 %v449_v41  ;;  %p641_p4 = pnand %p640_p3, %p634_p0 }
  0x89   :  { %444 = vmatpush3.bf16.msra.mxu0 %v441_v19 }
  0x8b   :  { %452 = vmatpush3.bf16.msra.mxu1 %v449_v41 }
  0x8c   :  { %454 = vmatprep.subr.bf16.mxu1 %v453_v44 }
  0x8f   :  { %456 = vmatpush3.bf16.msra.mxu1 %v453_v44 }
  0x90   :  { %458 = vmatprep.subr.bf16.mxu1 %v457_v47 }
  0x93   :  { %460 = vmatpush3.bf16.msra.mxu1 %v457_v47 }
 0x10f   :  { %v119_v4 = vpop.xlane.xlu0 %118 }
 0x110   :  { %v124_v5 = vmul.f32 0.03125, %v119_v4 }
 0x112   :  { %v126_v6 = vsub.f32 %v114_v0, %v124_v5 }
 0x113   :  { %v122_v7 = vpop.xlane.xlu0 %121 }
 0x114   :  { %v125_v8 = vmul.f32 0.03125, %v122_v7  ;;  %v128_v9 = vmul.f32 %v126_v6, %v126_v6 }
 0x116   :  { %v127_v10 = vsub.f32 %v115_v1, %v125_v8  ;;  %v130_v11 = vsel %vm116_vm0, %v128_v9, 0.0 }
 0x117   :  { %131 = vadd.xlane.f32.xlu1 %v130_v11 }
 0x118   :  { %v129_v12 = vmul.f32 %v127_v10, %v127_v10 }
 0x11a   :  { %v133_v13 = vsel %vm116_vm0, %v129_v12, 0.0 }
 0x11b   :  { %134 = vadd.xlane.f32.xlu1 %v133_v13 }
 0x1a4   :  { %v132_v20 = vpop.xlane.xlu1 %131 }
 0x1a5   :  { %v136_v21 = vmul.f32 0.03125, %v132_v20 }
 0x1a7   :  { %v138_v22 = vadd.f32 1e-05, %v136_v21 }
 0x1a8   :  { %v135_v23 = vpop.xlane.xlu1 %134 }
 0x1a9   :  { %471 = vrsqrt.f32 %v138_v22  ;;  %v137_v24 = vmul.f32 0.03125, %v135_v23 }
 0x1ab   :  { %v139_v25 = vadd.f32 1e-05, %v137_v24 }
 0x1ad   :  { %473 = vrsqrt.f32 %v139_v25 }
 0x1b3   :  { %v472_v26 = vpop.eup %471 }
 0x1b4   :  { %v142_v28 = vmul.f32 %v472_v26, %v126_v6 }
 0x1b6   :  { %v151_v30 = vmul.f32 %v383_v27, %v142_v28 }
 0x1b7   :  { %v474_v31 = vpop.eup %473 }
 0x1b8   :  { %v143_v32 = vmul.f32 %v474_v31, %v127_v10  ;;  %v160_v33 = vadd.f32 %v384_v29, %v151_v30 }
 0x1ba   :  { %v152_v34 = vmul.f32 %v383_v27, %v143_v32  ;;  %415 = vmatprep.mubr.msk.f32.mxu0 %vm116_vm0, %v160_v33 }
 0x1bc   :  { %v161_v35 = vadd.f32 %v384_v29, %v152_v34 }
 0x1be   :  { %416 = vmatmul.mubr.msk.f32.vlgmr.msra.gmra.mrb[0].mxu0 %vm116_vm0, %v161_v35 }
 0x291   :  { %v417_v49 = vpop.f32.mrb[0].mxu0 }
 0x292   :  { %v251_v50 = vadd.f32 %v417_v49, %v385_v48  ;;  %v245_v51 = vpop.f32.mrb[1].mxu0 }
 0x293   :  { %v246_v52 = vadd.f32 %v385_v48, %v245_v51 }
 0x294   :  { %v257_v53 = vmul.f32 0.70710677, %v251_v50  ;;  %v255_v60 = vmul.f32 0.5, %v251_v50 }
 0x295   :  { %v256_v54 = vmul.f32 0.70710677, %v246_v52  ;;  %v254_v58 = vmul.f32 0.5, %v246_v52 }
 0x296   :  { %475 = verf.f32 %v257_v53 }
 0x297   :  { %477 = verf.f32 %v256_v54 }
 0x2a0   :  { %v476_v55 = vpop.eup %475 }
 0x2a1   :  { %v478_v56 = vpop.eup %477  ;;  %v261_v57 = vadd.f32 1.0, %v476_v55 }
 0x2a2   :  { %v260_v59 = vadd.f32 1.0, %v478_v56 }
 0x2a3   :  { %v263_v62 = vmul.f32 %v261_v57, %v255_v60 }
 0x2a4   :  { %v262_v61 = vmul.f32 %v260_v59, %v254_v58 }
 0x2a6   :  { %434 = vmatprep.mubr.msk.f32.mxu1 %vm279_vm1, %v262_v61 }
 0x2a7   :  { %435 = vmatmul.mubr.msk.f32.vlgmr.msra.gmra.mrb[0].mxu1 %vm279_vm1, %v263_v62 }
 0x37a   :  { %v436_v0 = vpop.f32.mrb[0].mxu1 }
 0x37b   :  { %v358_v1 = vadd.f32 %v436_v0, %v388_v63  ;;  %v352_v2 = vpop.f32.mrb[1].mxu1 }
 0x37c   :  { %v353_v3 = vadd.f32 %v388_v63, %v352_v2 }
 0x37d   :  { %362 = vst.msk [vmem:[#allocation14 + $0x8] sm:$0xff] %vm116_vm0, %v358_v1 }
 0x37e   :  { %361 = vst.msk [vmem:[#allocation14] sm:$0xff] %vm116_vm0, %v353_v3 }
 0x37f   :  { %644 = shalt.err (!%p641_p4)
}
 0x380   :  { %s645_s20 = scalar_lea.hbm %s838_s7, 256 }
 0x381   :  { %p646_p5 = scmp.ne.s32.totalorder %s838_s7, %s645_s20  ;;  %p649_p6 = scmp.lt.u32.totalorder %s645_s20, %s838_s7 }
 0x383   :  { %p651_p7 = pnand %p649_p6, %p646_p5 }
 0x385   :  { %654 = shalt.err (!%p651_p7)
}
 0x386   :  { %374 = dma.vmem_to_hbm [thread:$0]  %s369_s14, 256, %s838_s7, [#allocation4], %s668_s25, %s668_s25, %s669_s26  }
 0x387   :  { %663 = dma.done.wait [#allocation4], 256  }
 0x388   :  { %664 = vsyncadd [#allocation4], 4294967040 }
 0x389   :  { %378 = vsyncpa [#allocation3], 1 }
 0x38a   :  { %379 = vsyncpa [#allocation6], 1 }
 0x38b   :  { %380 = vsyncpa [#allocation9], 1 }
 0x38c   :  { %381 = vsyncpa [#allocation12], 1 }
 0x38d   :  { %382 = vsyncpa [#allocation4], 1 }

</bundles_post_ra>
